<compile_context>
chip_gen: v5e
topology: v5e:2x2
jax: 0.10.0
libtpu: 0.0.40
codegen_flags: <defaults>
</compile_context>

<pallas_src>
import functools

import jax
import jax.numpy as jnp
from jax.experimental import pallas as pl
from jax.experimental.pallas import tpu as pltpu


def make_pixelcnn_mask(out_channels, in_channels, kernel_size, blind_center, dtype):
    """Same mask as MaskedConv2d.__init__ (PyTorch OIHW layout)."""
    K = kernel_size
    c = K // 2
    mask = jnp.ones((out_channels, in_channels, K, K), dtype=dtype)
    start = c + (0 if blind_center else 1)  # c + (not blind_center)
    mask = mask.at[:, :, c, start:].set(0)
    mask = mask.at[:, :, c + 1:, :].set(0)
    return mask


def _masked_conv_kernel(w_ref, p_ref, o_ref):
    # w_ref: (O, CKK_pad)       masked, flattened weights (VMEM-resident)
    # p_ref: (1, CKK_pad, H*W)  im2col patches for one image
    # o_ref: (1, O, H*W)        lane-dense output, already in NCHW order
    o_ref[0] = jnp.dot(
        w_ref[...], p_ref[0], preferred_element_type=jnp.float32
    ).astype(o_ref.dtype)


def masked_conv2d_pallas(x_nchw, weight_oikk, blind_center=False, compute_dtype=None):
    """Forward pass of MaskedConv2d: mask weights, conv2d (no bias, pad=K//2)."""
    N, C, H, W = x_nchw.shape
    O, Cw, K, Kw = weight_oikk.shape
    assert Cw == C and Kw == K
    # nn.Conv2d with padding=K//2 preserves HxW only for odd K (true for PixelCNN).
    assert K % 2 == 1, "MaskedConv2d assumes odd kernel_size (padding = K // 2)"
    p = K // 2

    out_dtype = x_nchw.dtype
    if compute_dtype is None:
        compute_dtype = x_nchw.dtype

    # --- glue: mask + flatten weights, pad input, im2col ---
    mask = make_pixelcnn_mask(O, C, K, blind_center, weight_oikk.dtype)
    w_flat = (weight_oikk * mask).reshape(O, C * K * K).astype(compute_dtype)

    x_pad = jnp.pad(x_nchw.astype(compute_dtype),
                    ((0, 0), (0, 0), (p, p), (p, p)))
    # Taps ordered (ky, kx) to match the (O, C, K, K) -> (O, C*K*K) flatten.
    taps = [x_pad[:, :, ky:ky + H, kx:kx + W]
            for ky in range(K) for kx in range(K)]            # each (N, C, H, W)
    patches = jnp.stack(taps, axis=2).reshape(N, C * K * K, H * W)

    CKK = C * K * K
    CKK_pad = ((CKK + 7) // 8) * 8            # sublane-align the contraction dim
    HW = H * W
    if CKK_pad != CKK:
        w_flat = jnp.pad(w_flat, ((0, 0), (0, CKK_pad - CKK)))
        patches = jnp.pad(patches, ((0, 0), (0, CKK_pad - CKK), (0, 0)))

    # --- Pallas: one fused matmul per image, lane-dense NCHW output ---
    out_flat = pl.pallas_call(
        _masked_conv_kernel,
        out_shape=jax.ShapeDtypeStruct((N, O, HW), out_dtype),
        grid=(N,),
        in_specs=[
            pl.BlockSpec((O, CKK_pad), lambda n: (0, 0)),        # resident weights
            pl.BlockSpec((1, CKK_pad, HW), lambda n: (n, 0, 0)),
        ],
        out_specs=pl.BlockSpec((1, O, HW), lambda n: (n, 0, 0)),
        compiler_params=pltpu.CompilerParams(
            dimension_semantics=("parallel",),
            vmem_limit_bytes=32 * 1024 * 1024,
        ),
    )(w_flat, patches)

    # Pure metadata reshape (contiguous) -> NCHW, no transpose needed.
    return out_flat.reshape(N, O, H, W)


def reference_masked_conv2d(x_nchw, weight_oikk, blind_center=False):
    """Pure-JAX reference (mirrors nn.Conv2d with masked weights)."""
    O, C, K, _ = weight_oikk.shape
    p = K // 2
    mask = make_pixelcnn_mask(O, C, K, blind_center, weight_oikk.dtype)
    return jax.lax.conv_general_dilated(
        x_nchw, weight_oikk * mask,
        window_strides=(1, 1), padding=((p, p), (p, p)),
        dimension_numbers=("NCHW", "OIHW", "NCHW"))


if __name__ == "__main__":
    # Small shapes consistent with the module: batch=2, in_ch=4, out_ch=8,
    # spatial 16x16, kernel_size=3.
    N, C, O, H, W, K = 2, 4, 8, 16, 16, 3

    key = jax.random.PRNGKey(0)
    kx, kw = jax.random.split(key)
    x = jax.random.normal(kx, (N, C, H, W), dtype=jnp.float32)
    weight = 0.1 * jax.random.normal(kw, (O, C, K, K), dtype=jnp.float32)

    # 1) f32 path, mask type "B" (center visible) — exact vs reference.
    fwd_b = jax.jit(functools.partial(masked_conv2d_pallas, blind_center=False))
    out_b = fwd_b(x, weight)
    jax.block_until_ready(out_b)
    ref_b = reference_masked_conv2d(x, weight, blind_center=False)
    assert out_b.shape == (N, O, H, W)
    assert jnp.allclose(out_b, ref_b, atol=1e-5, rtol=1e-5)

    # 2) f32 path, mask type "A" (blind center) — exercises the other mask.
    fwd_a = jax.jit(functools.partial(masked_conv2d_pallas, blind_center=True))
    out_a = fwd_a(x, weight)
    jax.block_until_ready(out_a)
    ref_a = reference_masked_conv2d(x, weight, blind_center=True)
    assert jnp.allclose(out_a, ref_a, atol=1e-5, rtol=1e-5)

    # 3) bf16 compute path (v6e/v7x perf mode), f32 accumulation — loose tol.
    fwd_bf16 = jax.jit(functools.partial(
        masked_conv2d_pallas, blind_center=False, compute_dtype=jnp.bfloat16))
    out_bf16 = fwd_bf16(x, weight)
    jax.block_until_ready(out_bf16)
    assert out_bf16.shape == (N, O, H, W)
    assert jnp.allclose(out_bf16.astype(jnp.float32), ref_b, atol=3e-2, rtol=3e-2)

    print("KERNEL_OK")
</pallas_src>

<mosaic_0001>
module attributes {stable_mosaic.version = 11 : i64} {
  func.func @_masked_conv_kernel(%arg0: i32, %arg1: memref<8x40xf32, #tpu.memory_space<vmem>>, %arg2: memref<1x40x256xf32, #tpu.memory_space<vmem>>, %arg3: memref<1x8x256xf32, #tpu.memory_space<vmem>>) attributes {dimension_semantics = [#tpu.dimension_semantics<parallel>], iteration_bounds = array<i64: 2>, scalar_prefetch = 0 : i64, scratch_operands = 0 : i64, tpu.core_type = #tpu.core_type<tc>, window_params = [{pipeline_mode = #tpu.pipeline_mode<synchronous>, transform_indices = @transform_0, window_bounds = array<i64: 8, 40>}, {transform_indices = @transform_1, window_bounds = array<i64: 1, 40, 256>}, {transform_indices = @transform_2, window_bounds = array<i64: 1, 8, 256>}]} {
    %c0 = arith.constant 0 : index
    %c0_0 = arith.constant 0 : index
    %0 = vector.load %arg1[%c0, %c0_0] : memref<8x40xf32, #tpu.memory_space<vmem>>, vector<8x40xf32>
    %c0_1 = arith.constant 0 : index
    %c0_2 = arith.constant 0 : index
    %c0_3 = arith.constant 0 : index
    %1 = vector.load %arg2[%c0_1, %c0_2, %c0_3] : memref<1x40x256xf32, #tpu.memory_space<vmem>>, vector<1x40x256xf32>
    %2 = vector.shape_cast %1 : vector<1x40x256xf32> to vector<40x256xf32>
    %cst = arith.constant dense<0.000000e+00> : vector<8x256xf32>
    %3 = tpu.matmul %0, %2, %cst {dimension_numbers = #tpu.dot_dimension_numbers<[1], [0], [0], [1], [0, 0, 1, 1], [], []>} : vector<8x40xf32>, vector<40x256xf32>, vector<8x256xf32> -> vector<8x256xf32>
    %c0_4 = arith.constant 0 : index
    %c0_5 = arith.constant 0 : index
    %c0_6 = arith.constant 0 : index
    %4 = vector.load %arg3[%c0_4, %c0_5, %c0_6] : memref<1x8x256xf32, #tpu.memory_space<vmem>>, vector<1x8x256xf32>
    %5 = vector.shape_cast %4 : vector<1x8x256xf32> to vector<8x256xf32>
    %6 = vector.shape_cast %3 : vector<8x256xf32> to vector<1x8x256xf32>
    tpu.vector_store %arg3[%c0_4, %c0_5, %c0_6], %6 {strides = array<i32>} : memref<1x8x256xf32, #tpu.memory_space<vmem>>, vector<1x8x256xf32>,
    return
  }
  func.func @transform_0(%arg0: i32) -> (i32, i32) {
    %c0_i32 = arith.constant 0 : i32
    %c0_i32_0 = arith.constant 0 : i32
    %c0_i32_1 = arith.constant 0 : i32
    return %c0_i32, %c0_i32_0 : i32, i32
  }
  func.func @transform_1(%arg0: i32) -> (i32, i32, i32) {
    %c0_i32 = arith.constant 0 : i32
    %c0_i32_0 = arith.constant 0 : i32
    %c0_i32_1 = arith.constant 0 : i32
    return %arg0, %c0_i32, %c0_i32_0 : i32, i32, i32
  }
  func.func @transform_2(%arg0: i32) -> (i32, i32, i32) {
    %c0_i32 = arith.constant 0 : i32
    %c0_i32_0 = arith.constant 0 : i32
    %c0_i32_1 = arith.constant 0 : i32
    return %arg0, %c0_i32, %c0_i32_0 : i32, i32, i32
  }
}

</mosaic_0001>

<bundles_post_ra>
// kernel: mul.1
= control target key start
LH: loop header
LB: loop body
LE: loop exit
PB: predicated region body
PF: predicated region fallthrough
CT: control target
= control target key end

     0   :  { %s210_s0 = inlined_call_operand.vmem [shape: f32[8,4,3,3], index: 0, kind: input, shape index: {}]   ;;  %s211_s1 = inlined_call_operand.vmem [shape: f32[8,4,3,3], index: 1, kind: input, shape index: {}]   ;;  %s212_s2 = inlined_call_operand.vmem [shape: f32[8,4,3,3], index: 2, kind: output, shape index: {}]  }
   0x1   :  { %v3_v0 = vld [vmem:[%s210_s0] sm:$0xf]  ;;  %v90_v2 = vld [vmem:[%s210_s0 + $0xc] sm:$0xf]  ;;  %v93_v5 = vld [vmem:[%s210_s0 + $0x18] sm:$0xf] }
   0x2   :  { %v4_v1 = vld [vmem:[%s211_s1] sm:$0xf]  ;;  %v91_v4 = vld [vmem:[%s211_s1 + $0xc] sm:$0xf]  ;;  %v94_v6 = vld [vmem:[%s211_s1 + $0x18] sm:$0xf] }
   0x3   :  { %v7_v3 = vmul.f32 %v4_v1, %v3_v0  ;;  %v16_v7 = vmul.f32 %v91_v4, %v90_v2  ;;  %v26_v8 = vmul.f32 %v94_v6, %v93_v5  ;;  %v96_v9 = vld [vmem:[%s210_s0 + $0x4] sm:$0xf]  ;;  %v99_v11 = vld [vmem:[%s210_s0 + $0x10] sm:$0xf]  ;;  %v102_v14 = vld [vmem:[%s210_s0 + $0x1c] sm:$0xf] }
   0x4   :  { %v97_v10 = vld [vmem:[%s211_s1 + $0x4] sm:$0xf]  ;;  %v100_v13 = vld [vmem:[%s211_s1 + $0x10] sm:$0xf]  ;;  %v103_v16 = vld [vmem:[%s211_s1 + $0x1c] sm:$0xf] }
   0x5   :  { %9 = vst [vmem:[%s212_s2] sm:$0xf] %v7_v3  ;;  %v36_v12 = vmul.f32 %v97_v10, %v96_v9  ;;  %v46_v15 = vmul.f32 %v100_v13, %v99_v11  ;;  %v105_v17 = vld [vmem:[%s210_s0 + $0x8] sm:$0xf]  ;;  %v56_v18 = vmul.f32 %v103_v16, %v102_v14  ;;  %v108_v20 = vld [vmem:[%s210_s0 + $0x14] sm:$0xf] }
   0x6   :  { %92 = vst [vmem:[%s212_s2 + $0xc] sm:$0xf] %v16_v7  ;;  %v106_v19 = vld [vmem:[%s211_s1 + $0x8] sm:$0xf]  ;;  %v109_v22 = vld [vmem:[%s211_s1 + $0x14] sm:$0xf] }
   0x7   :  { %95 = vst [vmem:[%s212_s2 + $0x18] sm:$0xf] %v26_v8  ;;  %v66_v21 = vmul.f32 %v106_v19, %v105_v17  ;;  %v111_v23 = vld [vmem:[%s210_s0 + $0x20] sm:$0xf]  ;;  %v76_v24 = vmul.f32 %v109_v22, %v108_v20 }
   0x8   :  { %98 = vst [vmem:[%s212_s2 + $0x4] sm:$0xf] %v36_v12  ;;  %v112_v25 = vld [vmem:[%s211_s1 + $0x20] sm:$0xf] }
   0x9   :  { %101 = vst [vmem:[%s212_s2 + $0x10] sm:$0xf] %v46_v15  ;;  %v86_v26 = vmul.f32 %v112_v25, %v111_v23 }
   0xa   :  { %104 = vst [vmem:[%s212_s2 + $0x1c] sm:$0xf] %v56_v18 }
   0xb   :  { %107 = vst [vmem:[%s212_s2 + $0x8] sm:$0xf] %v66_v21 }
   0xc   :  { %110 = vst [vmem:[%s212_s2 + $0x14] sm:$0xf] %v76_v24 }
   0xd   :  { %113 = vst [vmem:[%s212_s2 + $0x20] sm:$0xf] %v86_v26 }

// kernel: masked_conv2d_pallas.1
= control target key start
LH: loop header
LB: loop body
LE: loop exit
PB: predicated region body
PF: predicated region fallthrough
CT: control target
= control target key end

     0   :  { %s301_s9 = smov 0   ;;  %s325_s0 = inlined_call_operand.vmem [shape: f32[8,40], index: 0, kind: input, shape index: {}]   ;;  %s326_s1 = inlined_call_operand.vmem [shape: f32[2,40,256], index: 1, kind: input, shape index: {}]   ;;  %s327_s2 = inlined_call_operand.vmem [shape: f32[2,8,256], index: 2, kind: output, shape index: {}]  }
   0x1 LB: > { %s256_s10 = sadd.s32 4294967295, %s284_s9   ;;  %p260_p0 = scmp.ge.s32.totalorder %s284_s9, 1  ;;  %s284_s9 = sphi %s301_s9, %s12_s9  }
   0x2   : > { %p112_p1 = scmp.lt.s32.totalorder %s284_s9, 3 }
   0x4   : > { %p113_p2 = pnand %p260_p0, %p112_p1 }
   0x5   : > { %p134_p3 = scmp.lt.s32.totalorder (!%p113_p2), %s256_s10, 1 }
   0x6   : > { %116 = sbr.rel (%p113_p2) target bundleno = 153 (0x99), region = 28 }
   0xb   : > { %s329_s10 = smov (!%p134_p3, %s256_s10), 1  ;;  %v144_v10 = vld [vmem:[%s325_s0] sm:$0xff]  ;;  %vm155_vm0 = vcmask 326656  }
   0xc   : > { %s269_s11 = smul.u32 80, %s329_s10  ;;  %s268_s17 = sshll.u32 %s329_s10, 4 }
   0xd   : > { %s143_s20 = scalar_lea.vmem %s327_s2, %s268_s17 }
   0xe   : > { %s138_s14 = scalar_lea.vmem %s326_s1, %s269_s11 }
   0xf   : > { %v153_v0 = vld [vmem:[%s138_s14 + $0x40] sm:$0xff]  ;;  %v154_v1 = vld [vmem:[%s138_s14 + $0x48] sm:$0xff]  ;;  %v151_v2 = vld [vmem:[%s138_s14 + $0x30] sm:$0xff] }
  0x10   : > { %170 = vmatpush.msra.mxu0 %v153_v0  ;;  %190 = vmatpush.msra.mxu1 %v154_v1  ;;  %v152_v3 = vld [vmem:[%s138_s14 + $0x38] sm:$0xff]  ;;  %v149_v4 = vld [vmem:[%s138_s14 + $0x20] sm:$0xff]  ;;  %v150_v5 = vld [vmem:[%s138_s14 + $0x28] sm:$0xff] }
  0x11   : > { %v147_v6 = vld [vmem:[%s138_s14 + $0x10] sm:$0xff]  ;;  %v148_v7 = vld [vmem:[%s138_s14 + $0x18] sm:$0xff]  ;;  %v145_v8 = vld [vmem:[%s138_s14] sm:$0xff] }
  0x12   : > { %171 = vmatpush.msra.mxu0 %v151_v2  ;;  %191 = vmatpush.msra.mxu1 %v152_v3  ;;  %v146_v9 = vld [vmem:[%s138_s14 + $0x8] sm:$0xff] }
  0x14   : > { %172 = vmatpush.msra.mxu0 %v149_v4  ;;  %192 = vmatpush.msra.mxu1 %v150_v5 }
  0x16   : > { %173 = vmatpush.msra.mxu0 %v147_v6  ;;  %193 = vmatpush.msra.mxu1 %v148_v7 }
  0x18   : > { %174 = vmatpush.msra.mxu0 %v145_v8  ;;  %194 = vmatpush.msra.mxu1 %v146_v9 }
  0x19   : > { %264 = vmatmul.msk.f32.vlgmr.msra.gmra.mxu0 %vm155_vm0, %v144_v10  ;;  %265 = vmatmul.msk.f32.vlgmr.msra.gmra.mxu1 %vm155_vm0, %v144_v10 }
  0x96   : > { %v176_v11 = vpop.f32.mrf.mxu0  ;;  %v196_v12 = vpop.f32.mrf.mxu1 }
  0x97   : > { %199 = vst [vmem:[%s143_s20] sm:$0xff] %v176_v11 }
  0x98   : > { %200 = vst [vmem:[%s143_s20 + $0x8] sm:$0xff] %v196_v12 }
  0x99 PF: > { %s12_s9 = sadd.s32 1, %s284_s9  }
  0x9a   : > { %p9_p4 = scmp.ge.s32.totalorder %s12_s9, 4  }
  0x9c   :  { %11 = sbr.rel (!%p9_p4) target bundleno = 1 (0x1), region = 58 }

</bundles_post_ra>
